<compile_context>
chip_gen: v6e
topology: v6e:2x2x1
jax: 0.10.0
libtpu: 0.0.40
codegen_flags: <defaults>
</compile_context>

<pallas_src>
import jax
import jax.numpy as jnp
from jax.experimental import pallas as pl
from jax.experimental.pallas import tpu as pltpu


C1_OUT, C2_OUT = 4, 8
IMG = 28                      # Linear(4608,128) forces a 28x28 input
H1 = IMG - 2                  # 26 (valid 3x3)
H2 = H1 - 2                   # 24 (valid 3x3)
FLAT = C2_OUT * H2 * H2       # 4608
IN_FLAT = IMG * IMG           # 784
HID = 128
NCLS = 10
PAD_OUT = 128                 # lane-dense padded classifier width
TILE_N = 256                  # batch tile; fits scoped VMEM on v5e/v6e/v7x


# ----------------------------- Pallas kernel --------------------------------

def _fused_forward_kernel(x_ref, w1_ref, b1_ref, w2_ref, b2_ref, o_ref):
    """[folded conv1∘conv2∘flatten∘fc1] -> ReLU -> (Dropout=id) -> fc2 -> Softmax.

    x_ref : (TILE_N, 784)  bf16   flattened input pixels
    w1_ref: (784, 128)     bf16   W_eff (conv front-end folded into fc1 at init)
    b1_ref: (1, 128)       f32    b_eff
    w2_ref: (128, 128)     f32    fc2 weights, cols >= 10 exactly zero
    b2_ref: (1, 128)       f32    fc2 bias,    cols >= 10 = -1e30 (softmax padding)
    o_ref : (TILE_N, 128)  f32    softmax probabilities; cols >= 10 come out 0
    """
    h = jnp.dot(x_ref[...], w1_ref[...], preferred_element_type=jnp.float32)
    h = jnp.maximum(h + b1_ref[...], 0.0)
    # TODO(synk): nn.Dropout is identity at inference; train-mode RNG dropout omitted.
    z = jnp.dot(h, w2_ref[...], preferred_element_type=jnp.float32) + b2_ref[...]
    m = jnp.max(z, axis=-1, keepdims=True)
    e = jnp.exp(z - m)                               # padded logits (-1e30) -> exp == 0
    denom = jnp.sum(e, axis=-1, keepdims=True)
    o_ref[...] = (e * pl.reciprocal(denom, approx=True)).astype(o_ref.dtype)


# ------------------------------- wrapper -------------------------------------

def cnn_mnist_forward(x, params, tile_n=TILE_N):
    """x: (N, 28, 28) float (the PyTorch forward unsqueezes the channel dim itself)."""
    n = x.shape[0]
    feat = x.astype(jnp.float32).reshape(n, IN_FLAT).astype(jnp.bfloat16)

    tile = min(tile_n, ((n + 7) // 8) * 8)           # sublane-aligned batch tile
    grid = pl.cdiv(n, tile)
    n_pad = grid * tile
    if n_pad != n:                                   # no partial blocks / masked stores
        feat = jnp.pad(feat, ((0, n_pad - n), (0, 0)))

    probs = pl.pallas_call(
        _fused_forward_kernel,
        out_shape=jax.ShapeDtypeStruct((n_pad, PAD_OUT), jnp.float32),
        grid=(grid,),
        in_specs=[
            pl.BlockSpec((tile, IN_FLAT), lambda i: (i, 0)),   # streamed features
            pl.BlockSpec((IN_FLAT, HID), lambda i: (0, 0)),    # resident weights
            pl.BlockSpec((1, HID), lambda i: (0, 0)),
            pl.BlockSpec((HID, PAD_OUT), lambda i: (0, 0)),
            pl.BlockSpec((1, PAD_OUT), lambda i: (0, 0)),
        ],
        out_specs=pl.BlockSpec((tile, PAD_OUT), lambda i: (i, 0)),
        compiler_params=pltpu.CompilerParams(dimension_semantics=("parallel",)),
    )(feat, params["w_eff"], params["b_eff"], params["fc2_w"], params["fc2_b"])

    return probs[:n, :NCLS]                          # (N, 10)


# ------------------------------ parameters -----------------------------------

def _conv_valid(a, w, b):
    """NCHW valid conv via 9 shifted einsums (init-time fold / reference helper)."""
    o, _, kh_n, kw_n = w.shape
    ho, wo = a.shape[2] - kh_n + 1, a.shape[3] - kw_n + 1
    out = jnp.zeros((a.shape[0], o, ho, wo), jnp.float32)
    for kh in range(kh_n):
        for kw in range(kw_n):
            out = out + jnp.einsum("nihw,oi->nohw",
                                   a[:, :, kh:kh + ho, kw:kw + wo],
                                   w[:, :, kh, kw])
    return out + b.reshape(1, o, 1, 1)


def init_params(key):
    """Deterministic init; kernel-ready layouts + conv/fc1 fold done ONCE here.

    Mapping from a torch state_dict:
      conv{1,2}_{w,b}: torch tensors as-is ([o,i,kh,kw]).
      fc1_w = torch_fc1.weight.T (4608,128); fc1_b = torch_fc1.bias
      fc2_w[:, :10] = torch_fc2.weight.T; rest zeros
      fc2_b[0, :10] = torch_fc2.bias;     rest -1e30 (softmax padding)
      w_eff / b_eff are then the fold of conv1∘conv2∘flatten∘fc1 (exact: no
      nonlinearity between those layers).
    """
    k = jax.random.split(key, 8)

    def _u(kk, shape, bound):
        return jax.random.uniform(kk, shape, jnp.float32, -bound, bound)

    c1_bound = 1.0 / (1 * 9) ** 0.5          # torch Conv2d default-ish
    c2_bound = 1.0 / (4 * 9) ** 0.5
    conv1_w = _u(k[0], (C1_OUT, 1, 3, 3), c1_bound)
    conv1_b = _u(k[1], (C1_OUT,), c1_bound)
    conv2_w = _u(k[2], (C2_OUT, C1_OUT, 3, 3), c2_bound)
    conv2_b = _u(k[3], (C2_OUT,), c2_bound)
    # init_weights(): nn.Linear weights ~ Normal(0, 0.1); biases keep torch default.
    fc1_w = 0.1 * jax.random.normal(k[4], (FLAT, HID), jnp.float32)
    fc1_b = _u(k[5], (HID,), 1.0 / FLAT ** 0.5)
    fc2_w_small = 0.1 * jax.random.normal(k[6], (HID, NCLS), jnp.float32)
    fc2_b_small = _u(k[7], (NCLS,), 1.0 / HID ** 0.5)

    # ---- Fold conv1 -> conv2 -> flatten -> fc1 into one affine map 784 -> 128.
    def front(imgs):                               # (B, 28, 28) -> (B, 128) pre-ReLU
        a1 = _conv_valid(imgs[:, None], conv1_w, conv1_b)
        a2 = _conv_valid(a1, conv2_w, conv2_b)
        return a2.reshape(imgs.shape[0], FLAT) @ fc1_w + fc1_b

    basis = jnp.concatenate(
        [jnp.zeros((1, IN_FLAT), jnp.float32), jnp.eye(IN_FLAT, dtype=jnp.float32)],
        axis=0)
    hb = front(basis.reshape(-1, IMG, IMG))        # (1 + 784, 128), exact f32
    b_eff = hb[0]                                  # (128,)
    w_eff = hb[1:] - b_eff[None, :]                # (784, 128); rows = flattened pixels

    fc2_w = jnp.zeros((HID, PAD_OUT), jnp.float32).at[:, :NCLS].set(fc2_w_small)
    fc2_b = jnp.full((1, PAD_OUT), -1e30, jnp.float32).at[0, :NCLS].set(fc2_b_small)
    # The padded-softmax trick requires the padded fc2 columns to be exactly zero.
    assert float(jnp.max(jnp.abs(fc2_w[:, NCLS:]))) == 0.0

    return {
        # kernel-ready (folded) params
        "w_eff": w_eff.astype(jnp.bfloat16),       # bf16: fc1 stream is HBM-bound
        "b_eff": b_eff.reshape(1, HID),
        "fc2_w": fc2_w,
        "fc2_b": fc2_b,
        # raw module params (kept only for the pure-JAX reference)
        "conv1_w": conv1_w, "conv1_b": conv1_b,
        "conv2_w": conv2_w, "conv2_b": conv2_b,
        "fc1_w": fc1_w, "fc1_b": fc1_b,
        "fc2_w_raw": fc2_w_small, "fc2_b_raw": fc2_b_small,
    }


# --------------------------- pure-JAX reference -------------------------------

def reference_forward(x, params):
    """Straightforward f32 JAX implementation of cnnMNIST (unfolded convs)."""
    xx = x.astype(jnp.float32)[:, None]                        # (N,1,28,28)
    a1 = _conv_valid(xx, params["conv1_w"], params["conv1_b"])
    a2 = _conv_valid(a1, params["conv2_w"], params["conv2_b"])
    f = a2.reshape(a2.shape[0], -1)                            # NCHW flatten
    h = jnp.maximum(f @ params["fc1_w"] + params["fc1_b"], 0.0)
    z = h @ params["fc2_w_raw"] + params["fc2_b_raw"]
    return jax.nn.softmax(z, axis=1)


# ---------------------------------- main --------------------------------------

if __name__ == "__main__":
    key = jax.random.PRNGKey(0)
    kx, kp = jax.random.split(key)
    x = jax.random.normal(kx, (2, IMG, IMG), jnp.float32)      # (N, 28, 28), like MNIST
    params = init_params(kp)

    fwd = jax.jit(cnn_mnist_forward)
    y = jax.block_until_ready(fwd(x, params))

    assert y.shape == (2, NCLS)
    assert bool(jnp.all(jnp.isfinite(y)))
    assert bool(jnp.all(jnp.abs(jnp.sum(y, axis=1) - 1.0) < 5e-3))   # valid softmax rows

    y_ref = reference_forward(x, params)
    assert float(jnp.max(jnp.abs(y - y_ref))) < 3e-2, (y, y_ref)

    print("KERNEL_OK")
</pallas_src>

<mosaic_0001>
module attributes {stable_mosaic.version = 11 : i64} {
  func.func @_fused_forward_kernel(%arg0: i32, %arg1: memref<8x784xbf16, #tpu.memory_space<vmem>>, %arg2: memref<784x128xbf16, #tpu.memory_space<vmem>>, %arg3: memref<1x128xf32, #tpu.memory_space<vmem>>, %arg4: memref<128x128xf32, #tpu.memory_space<vmem>>, %arg5: memref<1x128xf32, #tpu.memory_space<vmem>>, %arg6: memref<8x128xf32, #tpu.memory_space<vmem>>) attributes {dimension_semantics = [#tpu.dimension_semantics<parallel>], iteration_bounds = array<i64: 1>, scalar_prefetch = 0 : i64, scratch_operands = 0 : i64, tpu.core_type = #tpu.core_type<tc>, window_params = [{transform_indices = @transform_0, window_bounds = array<i64: 8, 784>}, {pipeline_mode = #tpu.pipeline_mode<synchronous>, transform_indices = @transform_1, window_bounds = array<i64: 784, 128>}, {pipeline_mode = #tpu.pipeline_mode<synchronous>, transform_indices = @transform_2, window_bounds = array<i64: 1, 128>}, {pipeline_mode = #tpu.pipeline_mode<synchronous>, transform_indices = @transform_3, window_bounds = array<i64: 128, 128>}, {pipeline_mode = #tpu.pipeline_mode<synchronous>, transform_indices = @transform_4, window_bounds = array<i64: 1, 128>}, {transform_indices = @transform_5, window_bounds = array<i64: 8, 128>}]} {
    %c0 = arith.constant 0 : index
    %c0_0 = arith.constant 0 : index
    %0 = vector.load %arg1[%c0, %c0_0] : memref<8x784xbf16, #tpu.memory_space<vmem>>, vector<8x784xbf16>
    %c0_1 = arith.constant 0 : index
    %c0_2 = arith.constant 0 : index
    %1 = vector.load %arg2[%c0_1, %c0_2] : memref<784x128xbf16, #tpu.memory_space<vmem>>, vector<784x128xbf16>
    %cst = arith.constant dense<0.000000e+00> : vector<8x128xf32>
    %2 = tpu.matmul %0, %1, %cst {dimension_numbers = #tpu.dot_dimension_numbers<[1], [0], [0], [1], [0, 0, 1, 1], [], []>} : vector<8x784xbf16>, vector<784x128xbf16>, vector<8x128xf32> -> vector<8x128xf32>
    %c0_3 = arith.constant 0 : index
    %c0_4 = arith.constant 0 : index
    %3 = vector.load %arg3[%c0_3, %c0_4] : memref<1x128xf32, #tpu.memory_space<vmem>>, vector<1x128xf32>
    %4 = vector.broadcast %3 : vector<1x128xf32> to vector<8x128xf32>
    %5 = arith.addf %2, %4 : vector<8x128xf32>
    %cst_5 = arith.constant 0.000000e+00 : f32
    %6 = vector.broadcast %cst_5 : f32 to vector<8x128xf32>
    %7 = arith.maximumf %5, %6 : vector<8x128xf32>
    %c0_6 = arith.constant 0 : index
    %c0_7 = arith.constant 0 : index
    %8 = vector.load %arg4[%c0_6, %c0_7] : memref<128x128xf32, #tpu.memory_space<vmem>>, vector<128x128xf32>
    %cst_8 = arith.constant dense<0.000000e+00> : vector<8x128xf32>
    %9 = tpu.matmul %7, %8, %cst_8 {dimension_numbers = #tpu.dot_dimension_numbers<[1], [0], [0], [1], [0, 0, 1, 1], [], []>} : vector<8x128xf32>, vector<128x128xf32>, vector<8x128xf32> -> vector<8x128xf32>
    %c0_9 = arith.constant 0 : index
    %c0_10 = arith.constant 0 : index
    %10 = vector.load %arg5[%c0_9, %c0_10] : memref<1x128xf32, #tpu.memory_space<vmem>>, vector<1x128xf32>
    %11 = vector.broadcast %10 : vector<1x128xf32> to vector<8x128xf32>
    %12 = arith.addf %9, %11 : vector<8x128xf32>
    %cst_11 = arith.constant dense<0xFF800000> : vector<8xf32>
    %13 = vector.multi_reduction <maximumf>, %12, %cst_11 [1] : vector<8x128xf32> to vector<8xf32>
    %14 = vector.shape_cast %13 : vector<8xf32> to vector<8x1xf32>
    %15 = vector.broadcast %14 : vector<8x1xf32> to vector<8x128xf32>
    %16 = arith.subf %12, %15 : vector<8x128xf32>
    %17 = math.exp %16 : vector<8x128xf32>
    %cst_12 = arith.constant dense<0.000000e+00> : vector<8xf32>
    %18 = vector.multi_reduction <add>, %17, %cst_12 [1] : vector<8x128xf32> to vector<8xf32>
    %19 = vector.shape_cast %18 : vector<8xf32> to vector<8x1xf32>
    %20 = tpu.reciprocal %19 {approx = true} : vector<8x1xf32> -> vector<8x1xf32>
    %21 = vector.broadcast %20 : vector<8x1xf32> to vector<8x128xf32>
    %22 = arith.mulf %17, %21 : vector<8x128xf32>
    %c0_13 = arith.constant 0 : index
    %c0_14 = arith.constant 0 : index
    %23 = vector.load %arg6[%c0_13, %c0_14] : memref<8x128xf32, #tpu.memory_space<vmem>>, vector<8x128xf32>
    tpu.vector_store %arg6[%c0_13, %c0_14], %22 {strides = array<i32>} : memref<8x128xf32, #tpu.memory_space<vmem>>, vector<8x128xf32>,
    return
  }
  func.func @transform_0(%arg0: i32) -> (i32, i32) {
    %c0_i32 = arith.constant 0 : i32
    %c0_i32_0 = arith.constant 0 : i32
    return %arg0, %c0_i32 : i32, i32
  }
  func.func @transform_1(%arg0: i32) -> (i32, i32) {
    %c0_i32 = arith.constant 0 : i32
    %c0_i32_0 = arith.constant 0 : i32
    %c0_i32_1 = arith.constant 0 : i32
    return %c0_i32, %c0_i32_0 : i32, i32
  }
  func.func @transform_2(%arg0: i32) -> (i32, i32) {
    %c0_i32 = arith.constant 0 : i32
    %c0_i32_0 = arith.constant 0 : i32
    %c0_i32_1 = arith.constant 0 : i32
    return %c0_i32, %c0_i32_0 : i32, i32
  }
  func.func @transform_3(%arg0: i32) -> (i32, i32) {
    %c0_i32 = arith.constant 0 : i32
    %c0_i32_0 = arith.constant 0 : i32
    %c0_i32_1 = arith.constant 0 : i32
    return %c0_i32, %c0_i32_0 : i32, i32
  }
  func.func @transform_4(%arg0: i32) -> (i32, i32) {
    %c0_i32 = arith.constant 0 : i32
    %c0_i32_0 = arith.constant 0 : i32
    %c0_i32_1 = arith.constant 0 : i32
    return %c0_i32, %c0_i32_0 : i32, i32
  }
  func.func @transform_5(%arg0: i32) -> (i32, i32) {
    %c0_i32 = arith.constant 0 : i32
    %c0_i32_0 = arith.constant 0 : i32
    return %arg0, %c0_i32 : i32, i32
  }
}

</mosaic_0001>

<bundles_post_ra>
// kernel: cnn_mnist_forward.1
= control target key start
LH: loop header
LB: loop body
LE: loop exit
PB: predicated region body
PF: predicated region fallthrough
CT: control target
= control target key end

     0   :  { %10 = vsyncpa [#allocation3], 0  ;;  %s1007_s18 = smov [#allocation2]   ;;  %s1135_s0 = inlined_call_operand.vmem [shape: bf16[8,784], index: 0, kind: input, shape index: {}]   ;;  %s1136_s1 = inlined_call_operand.hbm [shape: bf16[784,128], index: 1, kind: input, shape index: {}]   ;;  %s1137_s2 = inlined_call_operand.vmem [shape: f32[1,128], index: 2, kind: input, shape index: {}]   ;;  %s1138_s3 = inlined_call_operand.vmem [shape: f32[128,128], index: 3, kind: input, shape index: {}]   ;;  %s1139_s4 = inlined_call_operand.vmem [shape: f32[1,128], index: 4, kind: input, shape index: {}]   ;;  %s1140_s5 = inlined_call_operand.vmem [shape: f32[8,128], index: 5, kind: output, shape index: {}]  }
   0x1   :  { %s18_s19 = sshll.u32 %s1007_s18, 4  ;;  %s19_s19 = int_to_ptr.vmem [resolvable:$true] %s18_s19 }
   0x2   :  { %s993_s20 = scalar_lea.vmem %s19_s19, 6272  ;;  %p998_p1 = scmp.lt.s32.totalorder %s19_s19, %s19_s19 }
   0x3   :  { %p994_p0 = scmp.ne.s32.totalorder %s19_s19, %s993_s20  ;;  %p999_p2 = scmp.lt.s32.totalorder %s993_s20, %s993_s20 }
   0x5   :  { %p1000_p3 = por %p999_p2, %p998_p1 }
   0x7   :  { %p1001_p4 = pnand %p1000_p3, %p994_p0 }
   0x9   :  { %1004 = shalt.err (!%p1001_p4)
}
   0xa   :  { %s1008_s21 = smov 64   ;;  %s1009_s22 = smov 4  }
   0xb   :  { %24 = dma.hbm_to_vmem [thread:$0]  %s1136_s1, 6272, %s19_s19, [#allocation3], %s1008_s21, %s1008_s21, %s1009_s22  }
   0xc   :  { %1005 = dma.done.wait [#allocation3], 6272  }
   0xd   :  { %1006 = vsyncadd [#allocation3], 4294961024  ;;  %v925_v0 = vld [vmem:[#allocation2 + $0x78] sm:$0xff]   ;;  %v929_v4 = vld [vmem:[#allocation2 + $0x70] sm:$0xff]   ;;  %v1010_v43 = vmov 0.0   ;;  %vm1011_vm0 = vmmov 0  }
   0xe   :  { %v926_v1 = vld [vmem:[#allocation2 + $0x38] sm:$0xff]   ;;  %794 = vmatprep.subr.bf16.mxu0 %v925_v0  ;;  %v930_v5 = vld [vmem:[#allocation2 + $0x30] sm:$0xff]   ;;  %v933_v8 = vld [vmem:[#allocation2 + $0x68] sm:$0xff]   ;;  %vm462_vm1 = vcmask 130048  }
   0xf   :  { %v927_v2 = vld [vmem:[#allocation2 + $0xf8] sm:$0xff]   ;;  %795 = vmatpush3.bf16.msra.mxu0 %v926_v1  ;;  %v931_v6 = vld [vmem:[#allocation2 + $0xf0] sm:$0xff]   ;;  %v934_v9 = vld [vmem:[#allocation2 + $0x28] sm:$0xff]  }
  0x10   :  { %v928_v3 = vld [vmem:[#allocation2 + $0xb8] sm:$0xff]   ;;  %816 = vmatprep.subr.bf16.mxu1 %v927_v2  ;;  %796 = vmatprep.subr.bf16.mxu0 %v929_v4  ;;  %v932_v7 = vld [vmem:[#allocation2 + $0xb0] sm:$0xff]   ;;  %v935_v10 = vld [vmem:[#allocation2 + $0xe8] sm:$0xff]  }
  0x11   :  { %817 = vmatpush3.bf16.msra.mxu1 %v928_v3  ;;  %v936_v11 = vld [vmem:[#allocation2 + $0xa8] sm:$0xff]   ;;  %v937_v12 = vld [vmem:[#allocation2 + $0x60] sm:$0xff]   ;;  %v941_v16 = vld [vmem:[#allocation2 + $0x58] sm:$0xff]  }
  0x12   :  { %818 = vmatprep.subr.bf16.mxu1 %v931_v6  ;;  %v938_v13 = vld [vmem:[#allocation2 + $0x20] sm:$0xff]   ;;  %v942_v17 = vld [vmem:[#allocation2 + $0x18] sm:$0xff]   ;;  %v945_v20 = vld [vmem:[#allocation2 + $0x50] sm:$0xff]  }
  0x13   :  { %797 = vmatpush3.bf16.msra.mxu0 %v930_v5  ;;  %v939_v14 = vld [vmem:[#allocation2 + $0xe0] sm:$0xff]   ;;  %v943_v18 = vld [vmem:[#allocation2 + $0xd8] sm:$0xff]   ;;  %v946_v21 = vld [vmem:[#allocation2 + $0x10] sm:$0xff]  }
  0x14   :  { %798 = vmatprep.subr.bf16.mxu0 %v933_v8  ;;  %v940_v15 = vld [vmem:[#allocation2 + $0xa0] sm:$0xff]   ;;  %v944_v19 = vld [vmem:[#allocation2 + $0x98] sm:$0xff]   ;;  %v947_v22 = vld [vmem:[#allocation2 + $0xd0] sm:$0xff]  }
  0x15   :  { %819 = vmatpush3.bf16.msra.mxu1 %v932_v7  ;;  %v948_v23 = vld [vmem:[#allocation2 + $0x90] sm:$0xff]   ;;  %v949_v24 = vld [vmem:[#allocation2 + $0x48] sm:$0xff]   ;;  %v953_v28 = vld [vmem:[#allocation2 + $0x40] sm:$0xff]  }
  0x16   :  { %820 = vmatprep.subr.bf16.mxu1 %v935_v10  ;;  %v950_v25 = vld [vmem:[#allocation2 + $0x8] sm:$0xff]   ;;  %v954_v29 = vld [vmem:[#allocation2] sm:$0xff]   ;;  %v959_v35 = vld [vmem:[#allocation2 + $0x178] sm:$0xff]  }
  0x17   :  { %799 = vmatpush3.bf16.msra.mxu0 %v934_v9  ;;  %v951_v26 = vld [vmem:[#allocation2 + $0xc8] sm:$0xff]   ;;  %v955_v30 = vld [vmem:[#allocation2 + $0xc0] sm:$0xff]   ;;  %v962_v39 = vld [vmem:[#allocation2 + $0x138] sm:$0xff]  }
  0x18   :  { %800 = vmatprep.subr.bf16.mxu0 %v937_v12  ;;  %v952_v27 = vld [vmem:[#allocation2 + $0x88] sm:$0xff]   ;;  %v35_v31 = vld [vmem:[%s1135_s0] sm:$0xff]  ;;  %v963_v40 = vld [vmem:[#allocation2 + $0x170] sm:$0xff]  }
  0x19   :  { %821 = vmatpush3.bf16.msra.mxu1 %v936_v11  ;;  %v736_v32 = vcombine.low %v35_v31, %v35_v31  ;;  %v737_v33 = vcombine.high %v35_v31, %v35_v31  ;;  %v958_v34 = vld [vmem:[#allocation2 + $0x80] sm:$0xff]   ;;  %v36_v36 = vld [vmem:[%s1135_s0 + $0x8] sm:$0xff]  ;;  %v964_v41 = vld [vmem:[#allocation2 + $0x130] sm:$0xff]  }
  0x1a   :  { %822 = vmatprep.subr.bf16.mxu1 %v939_v14  ;;  %v738_v37 = vcombine.low %v36_v36, %v36_v36  ;;  %v739_v38 = vcombine.high %v36_v36, %v36_v36  ;;  %v965_v42 = vld [vmem:[#allocation2 + $0x168] sm:$0xff]   ;;  %v967_v45 = vld [vmem:[#allocation2 + $0x160] sm:$0xff]   ;;  %v969_v47 = vld [vmem:[#allocation2 + $0x158] sm:$0xff]  }
  0x1b   :  { %801 = vmatpush3.bf16.msra.mxu0 %v938_v13  ;;  %498 = vmatprep.mubr.bf16.mxu0 %v737_v33  ;;  %v966_v44 = vld [vmem:[#allocation2 + $0x128] sm:$0xff]   ;;  %v968_v46 = vld [vmem:[#allocation2 + $0x120] sm:$0xff]   ;;  %v970_v48 = vld [vmem:[#allocation2 + $0x118] sm:$0xff]  }
  0x1c   :  { %802 = vmatprep.subr.bf16.mxu0 %v941_v16  ;;  %538 = vmatprep.mubr.bf16.mxu1 %v739_v38  ;;  %v971_v49 = vld [vmem:[#allocation2 + $0x150] sm:$0xff]   ;;  %v977_v50 = vld [vmem:[#allocation2 + $0x180] sm:$0xff]   ;;  %v980_v53 = vld [vmem:[%s1135_s0 + $0x18] ss:$0 sps:$4 sm:$0xff]  }
  0x1d   :  { %823 = vmatpush3.bf16.msra.mxu1 %v940_v15  ;;  %v37_v51 = vld [vmem:[%s1135_s0 + $0x10] sm:$0xff]  ;;  %v973_v55 = vld [vmem:[#allocation2 + $0x148] sm:$0xff]   ;;  %v975_v57 = vld [vmem:[#allocation2 + $0x140] sm:$0xff]  }
  0x1e   :  { %824 = vmatprep.subr.bf16.mxu1 %v943_v18  ;;  %v741_v52 = vcombine.high %v37_v51, %v37_v51  ;;  %v972_v54 = vld [vmem:[#allocation2 + $0x110] sm:$0xff]   ;;  %v974_v56 = vld [vmem:[#allocation2 + $0x108] sm:$0xff]   ;;  %v976_v58 = vld [vmem:[#allocation2 + $0x100] sm:$0xff]   ;;  %v740_v59 = vcombine.low %v37_v51, %v37_v51 }
  0x1f   :  { %803 = vmatpush3.bf16.msra.mxu0 %v942_v17  ;;  %v642_v60 = vld [vmem:[%s1138_s3 + $0x78] sm:$0xff]  ;;  %v641_v61 = vld [vmem:[%s1138_s3 + $0x70] sm:$0xff]  ;;  %v640_v62 = vld [vmem:[%s1138_s3 + $0x68] sm:$0xff] }
  0x20   :  { %804 = vmatprep.subr.bf16.mxu0 %v945_v20  ;;  %v639_v63 = vld [vmem:[%s1138_s3 + $0x60] sm:$0xff]  ;;  %v638_v0 = vld [vmem:[%s1138_s3 + $0x58] sm:$0xff]  ;;  %v637_v1 = vld [vmem:[%s1138_s3 + $0x50] sm:$0xff] }
  0x21   :  { %825 = vmatpush3.bf16.msra.mxu1 %v944_v19  ;;  %v636_v2 = vld [vmem:[%s1138_s3 + $0x48] sm:$0xff]  ;;  %v635_v3 = vld [vmem:[%s1138_s3 + $0x40] sm:$0xff]  ;;  %v634_v4 = vld [vmem:[%s1138_s3 + $0x38] sm:$0xff] }
  0x22   :  { %826 = vmatprep.subr.bf16.mxu1 %v947_v22  ;;  %v633_v5 = vld [vmem:[%s1138_s3 + $0x30] sm:$0xff]  ;;  %v632_v6 = vld [vmem:[%s1138_s3 + $0x28] sm:$0xff]  ;;  %v631_v7 = vld [vmem:[%s1138_s3 + $0x20] sm:$0xff] }
  0x23   :  { %805 = vmatpush3.bf16.msra.mxu0 %v946_v21  ;;  %v630_v8 = vld [vmem:[%s1138_s3 + $0x18] sm:$0xff]  ;;  %v629_v9 = vld [vmem:[%s1138_s3 + $0x10] sm:$0xff]  ;;  %v628_v10 = vld [vmem:[%s1138_s3 + $0x8] sm:$0xff] }
  0x24   :  { %806 = vmatprep.subr.bf16.mxu0 %v949_v24  ;;  %v627_v11 = vld [vmem:[%s1138_s3] sm:$0xff] }
  0x25   :  { %827 = vmatpush3.bf16.msra.mxu1 %v948_v23 }
  0x26   :  { %828 = vmatprep.subr.bf16.mxu1 %v951_v26 }
  0x27   :  { %807 = vmatpush3.bf16.msra.mxu0 %v950_v25  ;;  %v735_v25 = vld [vmem:[%s1137_s2] ss:$0 sm:$0xff] }
  0x28   :  { %808 = vmatprep.subr.bf16.mxu0 %v953_v28 }
  0x29   :  { %829 = vmatpush3.bf16.msra.mxu1 %v952_v27 }
  0x2a   :  { %830 = vmatprep.subr.bf16.mxu1 %v955_v30 }
  0x2b   :  { %809 = vmatpush3.bf16.msra.mxu0 %v954_v29 }
  0x2c   :  { %838 = vmatprep.subr.bf16.mxu0 %v959_v35 }
  0x2d   :  { %831 = vmatpush3.bf16.msra.mxu1 %v958_v34 }
  0x2e   :  { %499 = vmatmul.mubr.bf16.vlgmr.msra.gmra.mxu0 %v736_v32  ;;  %879 = vmatprep.subr.bf16.mxu1 %v1010_v43 }
  0x2f   :  { %839 = vmatpush3.bf16.msra.mxu0 %v962_v39  ;;  %578 = vmatprep.mubr.bf16.mxu0 %v741_v52 }
  0x30   :  { %539 = vmatmul.mubr.bf16.vlgmr.msra.gmra.mxu1 %v738_v37  ;;  %840 = vmatprep.subr.bf16.mxu0 %v963_v40  ;;  %v793_v37 = vld [vmem:[%s1139_s4] ss:$0 sm:$0xff] }
  0x31   :  { %881 = vmatprep.mubr.msk.bf16.mxu1 %vm1011_vm0, %v1010_v43  ;;  %880 = vmatpush3.bf16.msra.mxu1 %v977_v50 }
  0x32   :  { %885 = vmatprep.subr.mxu1 %v1010_v43 }
  0x33   :  { %841 = vmatpush3.bf16.msra.mxu0 %v964_v41 }
  0x34   :  { %842 = vmatprep.subr.bf16.mxu0 %v965_v42 }
  0x37   :  { %843 = vmatpush3.bf16.msra.mxu0 %v966_v44 }
  0x38   :  { %844 = vmatprep.subr.bf16.mxu0 %v967_v45  ;;  %882 = vmatmul.mubr.msk.bf16.vlgmr.msra.gmra.mxu1 %vm462_vm1, %v980_v53 }
  0x39   :  { %917 = vmatprep.mubr.msk.f32.mxu1 %vm1011_vm0, %v1010_v43  ;;  %886 = vmatpush3.msra.mxu1 %v642_v60 }
  0x3a   :  { %887 = vmatprep.subr.mxu1 %v1010_v43 }
  0x3b   :  { %845 = vmatpush3.bf16.msra.mxu0 %v968_v46  ;;  %888 = vmatpush3.msra.mxu1 %v641_v61 }
  0x3c   :  { %846 = vmatprep.subr.bf16.mxu0 %v969_v47  ;;  %889 = vmatprep.subr.mxu1 %v1010_v43 }
  0x3d   :  { %890 = vmatpush3.msra.mxu1 %v640_v62 }
  0x3e   :  { %891 = vmatprep.subr.mxu1 %v1010_v43 }
  0x3f   :  { %847 = vmatpush3.bf16.msra.mxu0 %v970_v48  ;;  %892 = vmatpush3.msra.mxu1 %v639_v63 }
  0x40   :  { %848 = vmatprep.subr.bf16.mxu0 %v971_v49  ;;  %893 = vmatprep.subr.mxu1 %v1010_v43 }
  0x41   :  { %894 = vmatpush3.msra.mxu1 %v638_v0 }
  0x42   :  { %895 = vmatprep.subr.mxu1 %v1010_v43 }
  0x43   :  { %849 = vmatpush3.bf16.msra.mxu0 %v972_v54  ;;  %896 = vmatpush3.msra.mxu1 %v637_v1 }
  0x44   :  { %850 = vmatprep.subr.bf16.mxu0 %v973_v55  ;;  %897 = vmatprep.subr.mxu1 %v1010_v43 }
  0x45   :  { %898 = vmatpush3.msra.mxu1 %v636_v2 }
  0x46   :  { %899 = vmatprep.subr.mxu1 %v1010_v43 }
  0x47   :  { %851 = vmatpush3.bf16.msra.mxu0 %v974_v56  ;;  %900 = vmatpush3.msra.mxu1 %v635_v3 }
  0x48   :  { %852 = vmatprep.subr.bf16.mxu0 %v975_v57  ;;  %901 = vmatprep.subr.mxu1 %v1010_v43 }
  0x49   :  { %902 = vmatpush3.msra.mxu1 %v634_v4 }
  0x4a   :  { %903 = vmatprep.subr.mxu1 %v1010_v43 }
  0x4b   :  { %853 = vmatpush3.bf16.msra.mxu0 %v976_v58  ;;  %904 = vmatpush3.msra.mxu1 %v633_v5 }
  0x4c   :  { %905 = vmatprep.subr.mxu1 %v1010_v43 }
  0x4d   :  { %906 = vmatpush3.msra.mxu1 %v632_v6 }
  0x4e   :  { %579 = vmatmul.mubr.bf16.vlgmr.msra.gmra.mxu0 %v740_v59  ;;  %907 = vmatprep.subr.mxu1 %v1010_v43 }
  0x4f   :  { %908 = vmatpush3.msra.mxu1 %v631_v7 }
  0x50   :  { %909 = vmatprep.subr.mxu1 %v1010_v43 }
  0x51   :  { %910 = vmatpush3.msra.mxu1 %v630_v8 }
  0x52   :  { %911 = vmatprep.subr.mxu1 %v1010_v43 }
  0x53   :  { %912 = vmatpush3.msra.mxu1 %v629_v9 }
  0x54   :  { %913 = vmatprep.subr.mxu1 %v1010_v43 }
  0x55   :  { %914 = vmatpush3.msra.mxu1 %v628_v10 }
  0x56   :  { %915 = vmatprep.subr.mxu1 %v1010_v43 }
  0x57   :  { %916 = vmatpush3.msra.mxu1 %v627_v11 }
  0xee   :  { %v810_v12 = vpop.f32.mrf.mxu0 }
  0xf0   :  { %v811_v13 = vpop.f32.mrf.mxu0  ;;  %v832_v14 = vpop.f32.mrf.mxu1 }
  0xf1   :  { %v812_v24 = vadd.f32 %v811_v13, %v810_v12 }
  0xf2   :  { %v813_v15 = vpop.f32.mrf.mxu0  ;;  %v833_v16 = vpop.f32.mrf.mxu1 }
  0xf3   :  { %v501_v26 = vadd.f32 %v812_v24, %v735_v25  ;;  %v834_v27 = vadd.f32 %v833_v16, %v832_v14 }
  0xf4   :  { %v814_v17 = vpop.f32.mrf.mxu0  ;;  %v835_v18 = vpop.f32.mrf.mxu1 }
  0xf5   :  { %v541_v30 = vadd.f32 %v834_v27, %v501_v26 }
  0xf6   :  { %v836_v19 = vpop.f32.mrf.mxu1 }
  0xf8   :  { %v620_v20 = vpop.f32.mrf.mxu1 }
  0xfa   :  { %v883_v21 = vpop.f32.mrf.mxu1 }
  0xfc   :  { %v623_v22 = vpop.f32.mrf.mxu1 }
  0xfe   :  { %v884_v23 = vpop.f32.mrf.mxu1 }
 0x10e   :  { %v854_v28 = vpop.f32.mrf.mxu0 }
 0x110   :  { %v855_v29 = vpop.f32.mrf.mxu0 }
 0x111   :  { %v856_v31 = vadd.f32 %v855_v29, %v854_v28 }
 0x112   :  { %v857_v32 = vpop.f32.mrf.mxu0 }
 0x113   :  { %v581_v33 = vadd.f32 %v856_v31, %v541_v30 }
 0x114   :  { %v858_v34 = vpop.f32.mrf.mxu0 }
 0x115   :  { %v621_v35 = vadd.f32 %v620_v20, %v581_v33 }
 0x117   :  { %v626_v36 = vmax.f32 %v621_v35, 0.0 }
 0x119   :  { %918 = vmatmul.mubr.f32.vlgmr.msra.gmra.mxu1 %v626_v36 }
 0x1d9   :  { %v716_v38 = vpop.f32.mrf.mxu1 }
 0x1da   :  { %v717_v39 = vadd.f32 %v793_v37, %v716_v38 }
 0x1db   :  { %v919_v40 = vpop.f32.mrf.mxu1 }
 0x1dc   :  { %720 = vmax.xlane.f32.xlu0 %v717_v39 }
 0x265   :  { %v721_v41 = vpop.xlane.xlu0 %720 }
 0x266   :  { %v722_v42 = vsub.f32 %v717_v39, %v721_v41 }
 0x268   :  { %v723_v43 = vmul.f32 1.442695, %v722_v42 }
 0x26a   :  { %981 = vpow2.f32 %v723_v43 }
 0x277   :  { %v982_v44 = vpop.eup %981 }
 0x278   :  { %725 = vadd.xlane.f32.xlu0 %v982_v44 }
 0x301   :  { %v726_v45 = vpop.xlane.xlu0 %725 }
 0x302   :  { %983 = vrcp.f32 %v726_v45 }
 0x30f   :  { %v984_v46 = vpop.eup %983 }
 0x310   :  { %v728_v47 = vmul.f32 %v984_v46, %v982_v44 }
 0x312   :  { %729 = vst [vmem:[%s1140_s5] sm:$0xff] %v728_v47 }
 0x313   :  { %734 = vsyncpa [#allocation3], 1 }

</bundles_post_ra>
